<compile_context>
chip_gen: v6e
topology: v6e:2x2x1
jax: 0.10.0
libtpu: 0.0.40
codegen_flags: <defaults>
</compile_context>

<pallas_src>
import functools

import jax
import jax.numpy as jnp
from jax.experimental import pallas as pl
from jax.experimental.pallas import tpu as pltpu


def _round_up(a, b):
    return (a + b - 1) // b * b


def _cdiv(a, b):
    return -(-a // b)


# ----------------------------------------------------------------------------
# Pallas kernel: one composed-conv matmul per tile of final patches
# ----------------------------------------------------------------------------

def _patch_embed_kernel(x_ref, w_ref, b_ref, o_ref):
    """x_ref : (tm, Keff)  im2col rows, features ordered (kh2, kw2, c, kh1, kw1)
       w_ref : (Keff, E)   composed weight W_eff (resident in VMEM)
       b_ref : (1, E)      composed bias, fp32 (resident in VMEM)
       o_ref : (tm, E)     output tile (out_dtype)
    """
    acc = jnp.dot(x_ref[...], w_ref[...], preferred_element_type=jnp.float32)
    o_ref[...] = (acc + b_ref[...]).astype(o_ref.dtype)


# ----------------------------------------------------------------------------
# Tile-size selection: >=2 tiles when possible, lane/sublane friendly sizes
# ----------------------------------------------------------------------------

def _choose_tm(M, tm_target):
    Mr = _round_up(M, 8)
    if Mr <= 16:
        return Mr                                   # too tiny to split
    if Mr <= 512:
        return _round_up(_cdiv(Mr, 2), 8)           # 2 tiles (both v7x TCs)
    # Large M: aim for >= 4 tiles, multiple of 128 rows, capped by target.
    tm = min(int(tm_target), _round_up(_cdiv(M, 4), 128))
    return max(128, _round_up(tm, 128))


# ----------------------------------------------------------------------------
# Wrapper: weight composition + one im2col layout pass + pallas_call
# ----------------------------------------------------------------------------

def patch_embed_2step_forward(x, params, *, flatten=True,
                              compute_dtype=jnp.bfloat16,
                              out_dtype=None,
                              tm_target=1024,
                              x_buffer_count=2):
    if out_dtype is None:
        out_dtype = compute_dtype

    B, C, H, W = x.shape
    D1, _, k1, _ = params["w1"].shape          # 64, in_chans, 4, 4
    E, _, k2, _ = params["w2"].shape           # embed_dim, 64, 4, 4
    patch = k1 * k2                            # effective patch size (16)
    assert H % patch == 0 and W % patch == 0
    H2, W2 = H // patch, W // patch
    M = B * H2 * W2                            # number of final patches
    K1 = C * k1 * k1
    P = k2 * k2
    Keff = P * K1                              # = 256 * C (lane-multiple)

    # --- compose the two convs (fp32, tiny tensors, once per call) ---------
    w1_mat = params["w1"].reshape(D1, K1).T.astype(jnp.float32)        # (K1, D1)
    w2_arr = params["w2"].transpose(2, 3, 1, 0).reshape(P, D1, E)      # (P, D1, E)
    w2_arr = w2_arr.astype(jnp.float32)
    w_eff = jnp.einsum("kd,pde->pke", w1_mat, w2_arr).reshape(Keff, E)
    b_eff = params["b2"].astype(jnp.float32) + jnp.einsum(
        "d,pde->e", params["b1"].astype(jnp.float32), w2_arr)
    w_eff = w_eff.astype(compute_dtype)
    b_eff = b_eff.reshape(1, E)                                        # fp32

    # --- single lane-dense im2col pass on the input ------------------------
    # Row m = (b, h2, w2) (== flatten(2).transpose(1,2) order),
    # feature = (kh2, kw2, c, kh1, kw1) to match W_eff.
    xp = x.reshape(B, C, H2, k2, k1, W2, k2, k1)
    xp = xp.transpose(0, 2, 5, 3, 6, 1, 4, 7)   # (B,H2,W2,kh2,kw2,C,kh1,kw1)
    xp = xp.reshape(M, Keff).astype(compute_dtype)

    # --- tiling -------------------------------------------------------------
    tm = _choose_tm(M, tm_target)
    Mp = _round_up(M, tm)
    if Mp != M:
        xp = jnp.pad(xp, ((0, Mp - M), (0, 0)))
    grid = (Mp // tm,)

    # --- VMEM budget (lane-padded, honest) ----------------------------------
    dsz = jnp.dtype(compute_dtype).itemsize
    osz = jnp.dtype(out_dtype).itemsize
    lp = lambda n: _round_up(n, 128)            # lane padding
    sp = lambda n: _round_up(n, 8)              # sublane padding
    nbuf_x = max(2, int(x_buffer_count))
    vmem_need = (nbuf_x * sp(tm) * lp(Keff) * dsz      # streamed x tiles
                 + 2 * sp(tm) * lp(E) * osz            # output tiles
                 + 2 * sp(Keff) * lp(E) * dsz          # resident W_eff
                 + 2 * 8 * lp(E) * 4)                  # resident bias
    vmem_limit = int(min(max(2 * vmem_need, 32 * 1024 * 1024),
                         48 * 1024 * 1024))            # <= v7x 64 MiB physical

    x_spec_kwargs = {}
    if x_buffer_count and int(x_buffer_count) != 2:
        # Only used if deeper buffering is explicitly requested.
        x_spec_kwargs["pipeline_mode"] = pl.Buffered(int(x_buffer_count))

    out = pl.pallas_call(
        _patch_embed_kernel,
        out_shape=jax.ShapeDtypeStruct((Mp, E), out_dtype),
        grid_spec=pltpu.PrefetchScalarGridSpec(
            num_scalar_prefetch=0,
            grid=grid,
            in_specs=[
                pl.BlockSpec((tm, Keff), lambda i: (i, 0), **x_spec_kwargs),
                pl.BlockSpec((Keff, E), lambda i: (0, 0)),   # resident weight
                pl.BlockSpec((1, E), lambda i: (0, 0)),      # resident bias
            ],
            out_specs=pl.BlockSpec((tm, E), lambda i: (i, 0)),
        ),
        compiler_params=pltpu.CompilerParams(
            dimension_semantics=("parallel",),
            vmem_limit_bytes=vmem_limit),
    )(xp, w_eff, b_eff)

    out = out[:M]
    if flatten:
        return out.reshape(B, H2 * W2, E)        # == x.flatten(2).transpose(1, 2)
    return out.reshape(B, H2, W2, E).transpose(0, 3, 1, 2)
    # TODO(synk): an optional norm_layer (default None -> nn.Identity) is not
    # implemented; a LayerNorm could be fused into the output-tile epilogue.


# ----------------------------------------------------------------------------
# Pure-JAX reference with real convolutions (PyTorch Conv2d semantics)
# ----------------------------------------------------------------------------

def _ref_forward(x, params, *, flatten=True):
    dn = ("NCHW", "OIHW", "NCHW")
    s1 = params["w1"].shape[-1]
    s2 = params["w2"].shape[-1]
    y1 = jax.lax.conv_general_dilated(
        x.astype(jnp.float32), params["w1"].astype(jnp.float32),
        (s1, s1), "VALID", dimension_numbers=dn,
        preferred_element_type=jnp.float32)
    y1 = y1 + params["b1"].reshape(1, -1, 1, 1)
    y2 = jax.lax.conv_general_dilated(
        y1, params["w2"].astype(jnp.float32),
        (s2, s2), "VALID", dimension_numbers=dn,
        preferred_element_type=jnp.float32)
    y2 = y2 + params["b2"].reshape(1, -1, 1, 1)
    if flatten:
        Bq, Eq, Ho, Wo = y2.shape
        return y2.reshape(Bq, Eq, Ho * Wo).transpose(0, 2, 1)
    return y2


# ----------------------------------------------------------------------------
# Main
# ----------------------------------------------------------------------------

if __name__ == "__main__":
    key = jax.random.PRNGKey(0)
    ks = jax.random.split(key, 5)

    # Small shapes consistent with the module: in_chans=3, dim1=64 (fixed by
    # the module), kernel/stride 4 twice -> effective patch 16; img=64, E=256.
    B, IN_CH, IMG, D1, E = 2, 3, 64, 64, 256
    x = jax.random.normal(ks[0], (B, IN_CH, IMG, IMG), jnp.float32)

    def conv_init(kw, kb, shape):
        fan_in = shape[1] * shape[2] * shape[3]
        bound = 1.0 / (fan_in ** 0.5)
        w = jax.random.uniform(kw, shape, jnp.float32, -bound, bound)
        b = jax.random.uniform(kb, (shape[0],), jnp.float32, -bound, bound)
        return w, b

    w1, b1 = conv_init(ks[1], ks[2], (D1, IN_CH, 4, 4))
    w2, b2 = conv_init(ks[3], ks[4], (E, D1, 4, 4))
    params = {"w1": w1, "b1": b1, "w2": w2, "b2": b2}

    num_patches = (IMG // 16) ** 2
    ref = _ref_forward(x, params)                 # fp32 reference (real convs)

    # fp32 path (tight tolerance) --------------------------------------------
    fwd_f32 = jax.jit(functools.partial(patch_embed_2step_forward,
                                        compute_dtype=jnp.float32,
                                        out_dtype=jnp.float32))
    out = jax.block_until_ready(fwd_f32(x, params))
    assert out.shape == (B, num_patches, E), out.shape
    err = float(jnp.max(jnp.abs(out - ref)))
    assert jnp.allclose(out, ref, rtol=1e-3, atol=1e-3), err

    # bf16 streams (default path on v6e/v7x), fp32 accumulation -------------
    fwd_bf16 = jax.jit(functools.partial(patch_embed_2step_forward,
                                         compute_dtype=jnp.bfloat16,
                                         out_dtype=jnp.bfloat16))
    out_bf = jax.block_until_ready(fwd_bf16(x, params))
    assert out_bf.shape == (B, num_patches, E), out_bf.shape
    err_bf = float(jnp.max(jnp.abs(out_bf.astype(jnp.float32) - ref)))
    assert jnp.allclose(out_bf.astype(jnp.float32), ref,
                        rtol=5e-2, atol=5e-2), err_bf

    print("KERNEL_OK")
</pallas_src>

<mosaic_0001>
module attributes {stable_mosaic.version = 11 : i64} {
  func.func @_patch_embed_kernel(%arg0: i32, %arg1: memref<16x768xf32, #tpu.memory_space<vmem>>, %arg2: memref<768x256xf32, #tpu.memory_space<vmem>>, %arg3: memref<1x256xf32, #tpu.memory_space<vmem>>, %arg4: memref<16x256xf32, #tpu.memory_space<vmem>>) attributes {dimension_semantics = [#tpu.dimension_semantics<parallel>], iteration_bounds = array<i64: 2>, scalar_prefetch = 0 : i64, scratch_operands = 0 : i64, tpu.core_type = #tpu.core_type<tc>, window_params = [{transform_indices = @transform_0, window_bounds = array<i64: 16, 768>}, {pipeline_mode = #tpu.pipeline_mode<synchronous>, transform_indices = @transform_1, window_bounds = array<i64: 768, 256>}, {pipeline_mode = #tpu.pipeline_mode<synchronous>, transform_indices = @transform_2, window_bounds = array<i64: 1, 256>}, {transform_indices = @transform_3, window_bounds = array<i64: 16, 256>}]} {
    %c0 = arith.constant 0 : index
    %c0_0 = arith.constant 0 : index
    %0 = vector.load %arg1[%c0, %c0_0] : memref<16x768xf32, #tpu.memory_space<vmem>>, vector<16x768xf32>
    %c0_1 = arith.constant 0 : index
    %c0_2 = arith.constant 0 : index
    %1 = vector.load %arg2[%c0_1, %c0_2] : memref<768x256xf32, #tpu.memory_space<vmem>>, vector<768x256xf32>
    %cst = arith.constant dense<0.000000e+00> : vector<16x256xf32>
    %2 = tpu.matmul %0, %1, %cst {dimension_numbers = #tpu.dot_dimension_numbers<[1], [0], [0], [1], [0, 0, 1, 1], [], []>} : vector<16x768xf32>, vector<768x256xf32>, vector<16x256xf32> -> vector<16x256xf32>
    %c0_3 = arith.constant 0 : index
    %c0_4 = arith.constant 0 : index
    %3 = vector.load %arg3[%c0_3, %c0_4] : memref<1x256xf32, #tpu.memory_space<vmem>>, vector<1x256xf32>
    %4 = vector.broadcast %3 : vector<1x256xf32> to vector<16x256xf32>
    %5 = arith.addf %2, %4 : vector<16x256xf32>
    %c0_5 = arith.constant 0 : index
    %c0_6 = arith.constant 0 : index
    %6 = vector.load %arg4[%c0_5, %c0_6] : memref<16x256xf32, #tpu.memory_space<vmem>>, vector<16x256xf32>
    tpu.vector_store %arg4[%c0_5, %c0_6], %5 {strides = array<i32>} : memref<16x256xf32, #tpu.memory_space<vmem>>, vector<16x256xf32>,
    return
  }
  func.func @transform_0(%arg0: i32) -> (i32, i32) {
    %c0_i32 = arith.constant 0 : i32
    %c0_i32_0 = arith.constant 0 : i32
    return %arg0, %c0_i32 : i32, i32
  }
  func.func @transform_1(%arg0: i32) -> (i32, i32) {
    %c0_i32 = arith.constant 0 : i32
    %c0_i32_0 = arith.constant 0 : i32
    %c0_i32_1 = arith.constant 0 : i32
    return %c0_i32, %c0_i32_0 : i32, i32
  }
  func.func @transform_2(%arg0: i32) -> (i32, i32) {
    %c0_i32 = arith.constant 0 : i32
    %c0_i32_0 = arith.constant 0 : i32
    %c0_i32_1 = arith.constant 0 : i32
    return %c0_i32, %c0_i32_0 : i32, i32
  }
  func.func @transform_3(%arg0: i32) -> (i32, i32) {
    %c0_i32 = arith.constant 0 : i32
    %c0_i32_0 = arith.constant 0 : i32
    return %arg0, %c0_i32 : i32, i32
  }
}

</mosaic_0001>

<bundles_post_ra>
// kernel: patch_embed_2step_forward.1
= control target key start
LH: loop header
LB: loop body
LE: loop exit
PB: predicated region body
PF: predicated region fallthrough
CT: control target
= control target key end

     0   :  { %8 = vsyncpa [#allocation3], 0  ;;  %s1620_s0 = inlined_call_operand.vmem [shape: f32[32,768], index: 0, kind: input, shape index: {}]   ;;  %s1621_s1 = inlined_call_operand.vmem [shape: f32[768,256], index: 1, kind: input, shape index: {}]   ;;  %s1622_s2 = inlined_call_operand.vmem [shape: f32[1,256], index: 2, kind: input, shape index: {}]   ;;  %s1623_s3 = inlined_call_operand.hbm [shape: f32[32,256], index: 3, kind: output, shape index: {}]  }
   0x1   :  { %10 = vsyncpa [#allocation3 + $0x1], 0  ;;  %s909_s12 = smov 0   ;;  %s911_s13 = smov 0  }
   0x2   :  { %s913_s14 = smov 0   ;;  %s915_s15 = smov 0  }
   0x3 LB: > { %s930_s16 = sadd.s32 4294967295, %s884_s15   ;;  %s703_s17 = sadd.s32 4294967294, %s884_s15   ;;  %s884_s15 = sphi %s915_s15, %s1630_s15   ;;  %s880_s14 = sphi %s913_s14, %s1629_s14   ;;  %s876_s13 = sphi %s911_s13, %s1628_s13   ;;  %s872_s12 = sphi %s909_s12, %s1627_s12  }
   0x4   : > { %s934_s18 = sadd.s32 1, %s884_s15   ;;  %s91_s19 = sadd.s32 1, %s880_s14 }
   0x5   : > { %s88_s20 = ssub.s32 %s884_s15, %s934_s18  ;;  %p101_p0 = scmp.ne.s32.totalorder %s880_s14, %s876_s13 }
   0x6   : > { %p89_p1 = scmp.eq.s32.totalorder %s88_s20, 0  ;;  %p102_p2 = scmp.eq.s32.totalorder %s930_s16, 1 }
   0x7   : > { %p107_p3 = scmp.ne.s32.totalorder %s876_s13, %s872_s12  ;;  %p108_p4 = scmp.eq.s32.totalorder %s703_s17, 1 }
   0x8   : > { %s945_s21 = scalar_select %p89_p1, %s880_s14, %s91_s19  }
   0x9   : > { %p947_p5 = por %p102_p2, %p101_p0  ;;  %p951_p6 = por %p108_p4, %p107_p3 }
   0xa   : > { %p706_p7 = scmp.ge.s32.totalorder %s884_s15, 1  ;;  %p142_p8 = scmp.lt.s32.totalorder %s884_s15, 3 }
   0xc   : > { %p143_p9 = pnand %p706_p7, %p142_p8 }
   0xd   : > { %s708_s28 = sshll.u32 (!%p143_p9), %s930_s16, 1  ;;  %s717_s6 = sshll.u32 (!%p143_p9), %s930_s16, 9 }
   0xe   : > { %146 = sbr.rel (%p143_p9) target bundleno = 365 (0x16d), region = 32  ;;  %p1254_p10 = scmp.lt.s32.totalorder (!%p143_p9), %s708_s28, 3 }
   0xf   : > { %s1576_s9 = scalar_lea.hbm (!%p143_p9), %s1623_s3, %s717_s6  ;;  %s886_s11 = smov (!%p143_p9), [#allocation2]  }
  0x10   : > { %s828_s17 = sshll.u32 (!%p143_p9), %s886_s11, 4  ;;  %s829_s17 = int_to_ptr.vmem [resolvable:$false] %s828_s17 }
  0x11   : > { %s830_s24 = scalar_lea.vmem (!%p143_p9), %s829_s17, 1024 }
  0x13   : > { %v218_v0 = vld [vmem:[%s1621_s1 + $0xf8] sm:$0xff]  ;;  %v217_v2 = vld [vmem:[%s1621_s1 + $0xf0] sm:$0xff]  ;;  %v216_v4 = vld [vmem:[%s1621_s1 + $0xe8] sm:$0xff]  ;;  %s1632_s28 = smov (!%p1254_p10, %s708_s28), 3 }
  0x14   : > { %v282_v1 = vld [vmem:[%s1621_s1 + $0x2f8] sm:$0xff]  ;;  %391 = vmatprep.subr.mxu0 %v218_v0  ;;  %v281_v3 = vld [vmem:[%s1621_s1 + $0x2f0] sm:$0xff]  ;;  %v280_v5 = vld [vmem:[%s1621_s1 + $0x2e8] sm:$0xff]  ;;  %s782_s19 = smul.u32 48, %s1632_s28 }
  0x15   : > { %468 = vmatprep.subr.mxu1 %v282_v1  ;;  %392 = vmatpush1.msra.mxu0 %v217_v2  ;;  %v215_v6 = vld [vmem:[%s1621_s1 + $0xe0] sm:$0xff]  ;;  %v214_v8 = vld [vmem:[%s1621_s1 + $0xd8] sm:$0xff]  ;;  %v213_v10 = vld [vmem:[%s1621_s1 + $0xd0] sm:$0xff] }
  0x16   : > { %469 = vmatpush1.msra.mxu1 %v281_v3  ;;  %v279_v7 = vld [vmem:[%s1621_s1 + $0x2e0] sm:$0xff]  ;;  %393 = vmatprep.subr.mxu0 %v216_v4  ;;  %v278_v9 = vld [vmem:[%s1621_s1 + $0x2d8] sm:$0xff]  ;;  %v277_v11 = vld [vmem:[%s1621_s1 + $0x2d0] sm:$0xff]  ;;  %s1340_s25 = scalar_lea.vmem %s1620_s0, %s782_s19 }
  0x17   : > { %470 = vmatprep.subr.mxu1 %v280_v5  ;;  %394 = vmatpush1.msra.mxu0 %v215_v6  ;;  %v212_v12 = vld [vmem:[%s1621_s1 + $0xc8] sm:$0xff]  ;;  %v211_v14 = vld [vmem:[%s1621_s1 + $0xc0] sm:$0xff]  ;;  %v210_v16 = vld [vmem:[%s1621_s1 + $0xb8] sm:$0xff] }
  0x18   : > { %471 = vmatpush1.msra.mxu1 %v279_v7  ;;  %v276_v13 = vld [vmem:[%s1621_s1 + $0x2c8] sm:$0xff]  ;;  %395 = vmatprep.subr.mxu0 %v214_v8  ;;  %v275_v15 = vld [vmem:[%s1621_s1 + $0x2c0] sm:$0xff]  ;;  %v274_v17 = vld [vmem:[%s1621_s1 + $0x2b8] sm:$0xff] }
  0x19   : > { %472 = vmatprep.subr.mxu1 %v278_v9  ;;  %396 = vmatpush1.msra.mxu0 %v213_v10  ;;  %v209_v18 = vld [vmem:[%s1621_s1 + $0xb0] sm:$0xff]  ;;  %v208_v20 = vld [vmem:[%s1621_s1 + $0xa8] sm:$0xff]  ;;  %v207_v22 = vld [vmem:[%s1621_s1 + $0xa0] sm:$0xff] }
  0x1a   : > { %473 = vmatpush1.msra.mxu1 %v277_v11  ;;  %397 = vmatprep.subr.mxu0 %v212_v12  ;;  %v273_v19 = vld [vmem:[%s1621_s1 + $0x2b0] sm:$0xff]  ;;  %v272_v21 = vld [vmem:[%s1621_s1 + $0x2a8] sm:$0xff]  ;;  %v271_v23 = vld [vmem:[%s1621_s1 + $0x2a0] sm:$0xff] }
  0x1b   : > { %474 = vmatprep.subr.mxu1 %v276_v13  ;;  %398 = vmatpush1.msra.mxu0 %v211_v14  ;;  %v206_v24 = vld [vmem:[%s1621_s1 + $0x98] sm:$0xff]  ;;  %v205_v26 = vld [vmem:[%s1621_s1 + $0x90] sm:$0xff]  ;;  %v204_v28 = vld [vmem:[%s1621_s1 + $0x88] sm:$0xff] }
  0x1c   : > { %475 = vmatpush1.msra.mxu1 %v275_v15  ;;  %399 = vmatprep.subr.mxu0 %v210_v16  ;;  %v270_v25 = vld [vmem:[%s1621_s1 + $0x298] sm:$0xff]  ;;  %v269_v27 = vld [vmem:[%s1621_s1 + $0x290] sm:$0xff]  ;;  %v268_v29 = vld [vmem:[%s1621_s1 + $0x288] sm:$0xff] }
  0x1d   : > { %476 = vmatprep.subr.mxu1 %v274_v17  ;;  %400 = vmatpush1.msra.mxu0 %v209_v18  ;;  %v203_v30 = vld [vmem:[%s1621_s1 + $0x80] sm:$0xff]  ;;  %v202_v32 = vld [vmem:[%s1621_s1 + $0x78] sm:$0xff]  ;;  %v201_v34 = vld [vmem:[%s1621_s1 + $0x70] sm:$0xff] }
  0x1e   : > { %477 = vmatpush1.msra.mxu1 %v273_v19  ;;  %401 = vmatprep.subr.mxu0 %v208_v20  ;;  %v267_v31 = vld [vmem:[%s1621_s1 + $0x280] sm:$0xff]  ;;  %v266_v33 = vld [vmem:[%s1621_s1 + $0x278] sm:$0xff]  ;;  %v265_v35 = vld [vmem:[%s1621_s1 + $0x270] sm:$0xff] }
  0x1f   : > { %478 = vmatprep.subr.mxu1 %v272_v21  ;;  %402 = vmatpush1.msra.mxu0 %v207_v22  ;;  %v200_v36 = vld [vmem:[%s1621_s1 + $0x68] sm:$0xff]  ;;  %v199_v38 = vld [vmem:[%s1621_s1 + $0x60] sm:$0xff]  ;;  %v198_v40 = vld [vmem:[%s1621_s1 + $0x58] sm:$0xff] }
  0x20   : > { %479 = vmatpush1.msra.mxu1 %v271_v23  ;;  %403 = vmatprep.subr.mxu0 %v206_v24  ;;  %v264_v37 = vld [vmem:[%s1621_s1 + $0x268] sm:$0xff]  ;;  %v263_v39 = vld [vmem:[%s1621_s1 + $0x260] sm:$0xff]  ;;  %v262_v41 = vld [vmem:[%s1621_s1 + $0x258] sm:$0xff] }
  0x21   : > { %480 = vmatprep.subr.mxu1 %v270_v25  ;;  %404 = vmatpush1.msra.mxu0 %v205_v26  ;;  %v197_v42 = vld [vmem:[%s1621_s1 + $0x50] sm:$0xff]  ;;  %v196_v44 = vld [vmem:[%s1621_s1 + $0x48] sm:$0xff]  ;;  %v195_v46 = vld [vmem:[%s1621_s1 + $0x40] sm:$0xff] }
  0x22   : > { %481 = vmatpush1.msra.mxu1 %v269_v27  ;;  %405 = vmatprep.subr.mxu0 %v204_v28  ;;  %v261_v43 = vld [vmem:[%s1621_s1 + $0x250] sm:$0xff]  ;;  %v260_v45 = vld [vmem:[%s1621_s1 + $0x248] sm:$0xff]  ;;  %v259_v47 = vld [vmem:[%s1621_s1 + $0x240] sm:$0xff] }
  0x23   : > { %482 = vmatprep.subr.mxu1 %v268_v29  ;;  %406 = vmatpush1.msra.mxu0 %v203_v30  ;;  %v194_v48 = vld [vmem:[%s1621_s1 + $0x38] sm:$0xff]  ;;  %v193_v50 = vld [vmem:[%s1621_s1 + $0x30] sm:$0xff]  ;;  %v192_v52 = vld [vmem:[%s1621_s1 + $0x28] sm:$0xff] }
  0x24   : > { %483 = vmatpush1.msra.mxu1 %v267_v31  ;;  %407 = vmatprep.subr.mxu0 %v202_v32  ;;  %v258_v49 = vld [vmem:[%s1621_s1 + $0x238] sm:$0xff]  ;;  %v257_v51 = vld [vmem:[%s1621_s1 + $0x230] sm:$0xff]  ;;  %v256_v53 = vld [vmem:[%s1621_s1 + $0x228] sm:$0xff] }
  0x25   : > { %484 = vmatprep.subr.mxu1 %v266_v33  ;;  %408 = vmatpush1.msra.mxu0 %v201_v34  ;;  %v191_v54 = vld [vmem:[%s1621_s1 + $0x20] sm:$0xff]  ;;  %v190_v56 = vld [vmem:[%s1621_s1 + $0x18] sm:$0xff]  ;;  %v189_v58 = vld [vmem:[%s1621_s1 + $0x10] sm:$0xff] }
  0x26   : > { %485 = vmatpush1.msra.mxu1 %v265_v35  ;;  %409 = vmatprep.subr.mxu0 %v200_v36  ;;  %v255_v55 = vld [vmem:[%s1621_s1 + $0x220] sm:$0xff]  ;;  %v254_v57 = vld [vmem:[%s1621_s1 + $0x218] sm:$0xff]  ;;  %v253_v59 = vld [vmem:[%s1621_s1 + $0x210] sm:$0xff] }
  0x27   : > { %486 = vmatprep.subr.mxu1 %v264_v37  ;;  %410 = vmatpush1.msra.mxu0 %v199_v38  ;;  %v188_v60 = vld [vmem:[%s1621_s1 + $0x8] sm:$0xff]  ;;  %v187_v62 = vld [vmem:[%s1621_s1] sm:$0xff]  ;;  %v250_v0 = vld [vmem:[%s1621_s1 + $0x1f8] sm:$0xff] }
  0x28   : > { %487 = vmatpush1.msra.mxu1 %v263_v39  ;;  %411 = vmatprep.subr.mxu0 %v198_v40  ;;  %v252_v61 = vld [vmem:[%s1621_s1 + $0x208] sm:$0xff]  ;;  %v251_v63 = vld [vmem:[%s1621_s1 + $0x200] sm:$0xff]  ;;  %v314_v1 = vld [vmem:[%s1621_s1 + $0x3f8] sm:$0xff] }
  0x29   : > { %488 = vmatprep.subr.mxu1 %v262_v41  ;;  %412 = vmatpush1.msra.mxu0 %v197_v42  ;;  %v249_v2 = vld [vmem:[%s1621_s1 + $0x1f0] sm:$0xff]  ;;  %v248_v4 = vld [vmem:[%s1621_s1 + $0x1e8] sm:$0xff]  ;;  %v247_v6 = vld [vmem:[%s1621_s1 + $0x1e0] sm:$0xff] }
  0x2a   : > { %489 = vmatpush1.msra.mxu1 %v261_v43  ;;  %413 = vmatprep.subr.mxu0 %v196_v44  ;;  %v313_v3 = vld [vmem:[%s1621_s1 + $0x3f0] sm:$0xff]  ;;  %v312_v5 = vld [vmem:[%s1621_s1 + $0x3e8] sm:$0xff]  ;;  %v311_v7 = vld [vmem:[%s1621_s1 + $0x3e0] sm:$0xff] }
  0x2b   : > { %490 = vmatprep.subr.mxu1 %v260_v45  ;;  %414 = vmatpush1.msra.mxu0 %v195_v46  ;;  %v246_v8 = vld [vmem:[%s1621_s1 + $0x1d8] sm:$0xff]  ;;  %v245_v10 = vld [vmem:[%s1621_s1 + $0x1d0] sm:$0xff]  ;;  %v244_v12 = vld [vmem:[%s1621_s1 + $0x1c8] sm:$0xff] }
  0x2c   : > { %491 = vmatpush1.msra.mxu1 %v259_v47  ;;  %415 = vmatprep.subr.mxu0 %v194_v48  ;;  %v310_v9 = vld [vmem:[%s1621_s1 + $0x3d8] sm:$0xff]  ;;  %v309_v11 = vld [vmem:[%s1621_s1 + $0x3d0] sm:$0xff]  ;;  %v308_v13 = vld [vmem:[%s1621_s1 + $0x3c8] sm:$0xff] }
  0x2d   : > { %492 = vmatprep.subr.mxu1 %v258_v49  ;;  %416 = vmatpush1.msra.mxu0 %v193_v50  ;;  %v243_v14 = vld [vmem:[%s1621_s1 + $0x1c0] sm:$0xff]  ;;  %v242_v16 = vld [vmem:[%s1621_s1 + $0x1b8] sm:$0xff]  ;;  %v241_v18 = vld [vmem:[%s1621_s1 + $0x1b0] sm:$0xff] }
  0x2e   : > { %493 = vmatpush1.msra.mxu1 %v257_v51  ;;  %417 = vmatprep.subr.mxu0 %v192_v52  ;;  %v307_v15 = vld [vmem:[%s1621_s1 + $0x3c0] sm:$0xff]  ;;  %v306_v17 = vld [vmem:[%s1621_s1 + $0x3b8] sm:$0xff]  ;;  %v305_v19 = vld [vmem:[%s1621_s1 + $0x3b0] sm:$0xff] }
  0x2f   : > { %494 = vmatprep.subr.mxu1 %v256_v53  ;;  %418 = vmatpush1.msra.mxu0 %v191_v54  ;;  %v240_v20 = vld [vmem:[%s1621_s1 + $0x1a8] sm:$0xff]  ;;  %v239_v22 = vld [vmem:[%s1621_s1 + $0x1a0] sm:$0xff]  ;;  %v238_v24 = vld [vmem:[%s1621_s1 + $0x198] sm:$0xff] }
  0x30   : > { %495 = vmatpush1.msra.mxu1 %v255_v55  ;;  %419 = vmatprep.subr.mxu0 %v190_v56  ;;  %v304_v21 = vld [vmem:[%s1621_s1 + $0x3a8] sm:$0xff]  ;;  %v303_v23 = vld [vmem:[%s1621_s1 + $0x3a0] sm:$0xff]  ;;  %v302_v25 = vld [vmem:[%s1621_s1 + $0x398] sm:$0xff] }
  0x31   : > { %496 = vmatprep.subr.mxu1 %v254_v57  ;;  %420 = vmatpush1.msra.mxu0 %v189_v58  ;;  %v237_v26 = vld [vmem:[%s1621_s1 + $0x190] sm:$0xff]  ;;  %v236_v28 = vld [vmem:[%s1621_s1 + $0x188] sm:$0xff]  ;;  %v235_v30 = vld [vmem:[%s1621_s1 + $0x180] sm:$0xff] }
  0x32   : > { %497 = vmatpush1.msra.mxu1 %v253_v59  ;;  %421 = vmatprep.subr.mxu0 %v188_v60  ;;  %v301_v27 = vld [vmem:[%s1621_s1 + $0x390] sm:$0xff]  ;;  %v300_v29 = vld [vmem:[%s1621_s1 + $0x388] sm:$0xff]  ;;  %v299_v31 = vld [vmem:[%s1621_s1 + $0x380] sm:$0xff] }
  0x33   : > { %498 = vmatprep.subr.mxu1 %v252_v61  ;;  %422 = vmatpush1.msra.mxu0 %v187_v62  ;;  %v234_v32 = vld [vmem:[%s1621_s1 + $0x178] sm:$0xff]  ;;  %v233_v34 = vld [vmem:[%s1621_s1 + $0x170] sm:$0xff]  ;;  %v232_v36 = vld [vmem:[%s1621_s1 + $0x168] sm:$0xff] }
  0x34   : > { %499 = vmatpush1.msra.mxu1 %v251_v63  ;;  %423 = vmatprep.subr.mxu0 %v250_v0  ;;  %v298_v33 = vld [vmem:[%s1621_s1 + $0x378] sm:$0xff]  ;;  %v297_v35 = vld [vmem:[%s1621_s1 + $0x370] sm:$0xff]  ;;  %v296_v37 = vld [vmem:[%s1621_s1 + $0x368] sm:$0xff] }
  0x35   : > { %500 = vmatprep.subr.mxu1 %v314_v1  ;;  %424 = vmatpush2.msra.mxu0 %v249_v2  ;;  %v231_v38 = vld [vmem:[%s1621_s1 + $0x160] sm:$0xff]  ;;  %v230_v40 = vld [vmem:[%s1621_s1 + $0x158] sm:$0xff]  ;;  %v229_v42 = vld [vmem:[%s1621_s1 + $0x150] sm:$0xff] }
  0x36   : > { %501 = vmatpush2.msra.mxu1 %v313_v3  ;;  %425 = vmatprep.subr.mxu0 %v248_v4  ;;  %v295_v39 = vld [vmem:[%s1621_s1 + $0x360] sm:$0xff]  ;;  %v294_v41 = vld [vmem:[%s1621_s1 + $0x358] sm:$0xff]  ;;  %v293_v43 = vld [vmem:[%s1621_s1 + $0x350] sm:$0xff] }
  0x37   : > { %502 = vmatprep.subr.mxu1 %v312_v5  ;;  %426 = vmatpush2.msra.mxu0 %v247_v6  ;;  %v228_v44 = vld [vmem:[%s1621_s1 + $0x148] sm:$0xff]  ;;  %v227_v46 = vld [vmem:[%s1621_s1 + $0x140] sm:$0xff]  ;;  %v226_v48 = vld [vmem:[%s1621_s1 + $0x138] sm:$0xff] }
  0x38   : > { %503 = vmatpush2.msra.mxu1 %v311_v7  ;;  %427 = vmatprep.subr.mxu0 %v246_v8  ;;  %v292_v45 = vld [vmem:[%s1621_s1 + $0x348] sm:$0xff]  ;;  %v291_v47 = vld [vmem:[%s1621_s1 + $0x340] sm:$0xff]  ;;  %v290_v49 = vld [vmem:[%s1621_s1 + $0x338] sm:$0xff] }
  0x39   : > { %504 = vmatprep.subr.mxu1 %v310_v9  ;;  %428 = vmatpush2.msra.mxu0 %v245_v10  ;;  %v225_v50 = vld [vmem:[%s1621_s1 + $0x130] sm:$0xff]  ;;  %v224_v52 = vld [vmem:[%s1621_s1 + $0x128] sm:$0xff]  ;;  %v223_v54 = vld [vmem:[%s1621_s1 + $0x120] sm:$0xff] }
  0x3a   : > { %505 = vmatpush2.msra.mxu1 %v309_v11  ;;  %429 = vmatprep.subr.mxu0 %v244_v12  ;;  %v289_v51 = vld [vmem:[%s1621_s1 + $0x330] sm:$0xff]  ;;  %v288_v53 = vld [vmem:[%s1621_s1 + $0x328] sm:$0xff]  ;;  %v287_v55 = vld [vmem:[%s1621_s1 + $0x320] sm:$0xff] }
  0x3b   : > { %506 = vmatprep.subr.mxu1 %v308_v13  ;;  %430 = vmatpush2.msra.mxu0 %v243_v14  ;;  %v222_v56 = vld [vmem:[%s1621_s1 + $0x118] sm:$0xff]  ;;  %v221_v58 = vld [vmem:[%s1621_s1 + $0x110] sm:$0xff]  ;;  %v220_v60 = vld [vmem:[%s1621_s1 + $0x108] sm:$0xff] }
  0x3c   : > { %507 = vmatpush2.msra.mxu1 %v307_v15  ;;  %431 = vmatprep.subr.mxu0 %v242_v16  ;;  %v286_v57 = vld [vmem:[%s1621_s1 + $0x318] sm:$0xff]  ;;  %v285_v59 = vld [vmem:[%s1621_s1 + $0x310] sm:$0xff]  ;;  %v284_v61 = vld [vmem:[%s1621_s1 + $0x308] sm:$0xff] }
  0x3d   : > { %508 = vmatprep.subr.mxu1 %v306_v17  ;;  %432 = vmatpush2.msra.mxu0 %v241_v18  ;;  %v219_v62 = vld [vmem:[%s1621_s1 + $0x100] sm:$0xff]  ;;  %v176_v63 = vld [vmem:[%s1340_s25 + $0x8] sm:$0xff]  ;;  %v178_v1 = vld [vmem:[%s1340_s25 + $0x18] sm:$0xff] }
  0x3e   : > { %509 = vmatpush2.msra.mxu1 %v305_v19  ;;  %433 = vmatprep.subr.mxu0 %v240_v20  ;;  %v283_v0 = vld [vmem:[%s1621_s1 + $0x300] sm:$0xff]  ;;  %v177_v3 = vld [vmem:[%s1340_s25 + $0x10] sm:$0xff]  ;;  %v346_v4 = vld [vmem:[%s1621_s1 + $0x4f8] sm:$0xff] }
  0x3f   : > { %510 = vmatprep.subr.mxu1 %v304_v21  ;;  %434 = vmatpush2.msra.mxu0 %v239_v22  ;;  %v175_v2 = vld [vmem:[%s1340_s25] sm:$0xff]  ;;  %v345_v5 = vld [vmem:[%s1621_s1 + $0x4f0] sm:$0xff]  ;;  %v344_v6 = vld [vmem:[%s1621_s1 + $0x4e8] sm:$0xff] }
  0x40   : > { %511 = vmatpush2.msra.mxu1 %v303_v23  ;;  %435 = vmatprep.subr.mxu0 %v238_v24  ;;  %v343_v7 = vld [vmem:[%s1621_s1 + $0x4e0] sm:$0xff]  ;;  %v342_v8 = vld [vmem:[%s1621_s1 + $0x4d8] sm:$0xff]  ;;  %v341_v9 = vld [vmem:[%s1621_s1 + $0x4d0] sm:$0xff] }
  0x41   : > { %512 = vmatprep.subr.mxu1 %v302_v25  ;;  %436 = vmatpush2.msra.mxu0 %v237_v26  ;;  %v340_v10 = vld [vmem:[%s1621_s1 + $0x4c8] sm:$0xff]  ;;  %v339_v11 = vld [vmem:[%s1621_s1 + $0x4c0] sm:$0xff]  ;;  %v338_v12 = vld [vmem:[%s1621_s1 + $0x4b8] sm:$0xff] }
  0x42   : > { %513 = vmatpush2.msra.mxu1 %v301_v27  ;;  %437 = vmatprep.subr.mxu0 %v236_v28  ;;  %v337_v13 = vld [vmem:[%s1621_s1 + $0x4b0] sm:$0xff]  ;;  %v336_v14 = vld [vmem:[%s1621_s1 + $0x4a8] sm:$0xff]  ;;  %v335_v15 = vld [vmem:[%s1621_s1 + $0x4a0] sm:$0xff] }
  0x43   : > { %514 = vmatprep.subr.mxu1 %v300_v29  ;;  %438 = vmatpush2.msra.mxu0 %v235_v30  ;;  %v334_v16 = vld [vmem:[%s1621_s1 + $0x498] sm:$0xff]  ;;  %v333_v17 = vld [vmem:[%s1621_s1 + $0x490] sm:$0xff]  ;;  %v332_v18 = vld [vmem:[%s1621_s1 + $0x488] sm:$0xff] }
  0x44   : > { %515 = vmatpush2.msra.mxu1 %v299_v31  ;;  %439 = vmatprep.subr.mxu0 %v234_v32  ;;  %v331_v19 = vld [vmem:[%s1621_s1 + $0x480] sm:$0xff]  ;;  %v330_v20 = vld [vmem:[%s1621_s1 + $0x478] sm:$0xff]  ;;  %v329_v21 = vld [vmem:[%s1621_s1 + $0x470] sm:$0xff] }
  0x45   : > { %516 = vmatprep.subr.mxu1 %v298_v33  ;;  %440 = vmatpush2.msra.mxu0 %v233_v34  ;;  %v328_v22 = vld [vmem:[%s1621_s1 + $0x468] sm:$0xff]  ;;  %v327_v23 = vld [vmem:[%s1621_s1 + $0x460] sm:$0xff]  ;;  %v326_v24 = vld [vmem:[%s1621_s1 + $0x458] sm:$0xff] }
  0x46   : > { %517 = vmatpush2.msra.mxu1 %v297_v35  ;;  %441 = vmatprep.subr.mxu0 %v232_v36  ;;  %v325_v25 = vld [vmem:[%s1621_s1 + $0x450] sm:$0xff]  ;;  %v324_v26 = vld [vmem:[%s1621_s1 + $0x448] sm:$0xff]  ;;  %v323_v27 = vld [vmem:[%s1621_s1 + $0x440] sm:$0xff] }
  0x47   : > { %518 = vmatprep.subr.mxu1 %v296_v37  ;;  %442 = vmatpush2.msra.mxu0 %v231_v38  ;;  %v322_v28 = vld [vmem:[%s1621_s1 + $0x438] sm:$0xff]  ;;  %v321_v29 = vld [vmem:[%s1621_s1 + $0x430] sm:$0xff]  ;;  %v320_v30 = vld [vmem:[%s1621_s1 + $0x428] sm:$0xff] }
  0x48   : > { %519 = vmatpush2.msra.mxu1 %v295_v39  ;;  %443 = vmatprep.subr.mxu0 %v230_v40  ;;  %v319_v31 = vld [vmem:[%s1621_s1 + $0x420] sm:$0xff]  ;;  %v318_v32 = vld [vmem:[%s1621_s1 + $0x418] sm:$0xff]  ;;  %v317_v33 = vld [vmem:[%s1621_s1 + $0x410] sm:$0xff] }
  0x49   : > { %520 = vmatprep.subr.mxu1 %v294_v41  ;;  %444 = vmatpush2.msra.mxu0 %v229_v42  ;;  %v316_v34 = vld [vmem:[%s1621_s1 + $0x408] sm:$0xff]  ;;  %v315_v35 = vld [vmem:[%s1621_s1 + $0x400] sm:$0xff]  ;;  %v378_v36 = vld [vmem:[%s1621_s1 + $0x5f8] sm:$0xff] }
  0x4a   : > { %521 = vmatpush2.msra.mxu1 %v293_v43  ;;  %445 = vmatprep.subr.mxu0 %v228_v44  ;;  %v377_v37 = vld [vmem:[%s1621_s1 + $0x5f0] sm:$0xff]  ;;  %v376_v38 = vld [vmem:[%s1621_s1 + $0x5e8] sm:$0xff]  ;;  %v375_v39 = vld [vmem:[%s1621_s1 + $0x5e0] sm:$0xff] }
  0x4b   : > { %522 = vmatprep.subr.mxu1 %v292_v45  ;;  %446 = vmatpush2.msra.mxu0 %v227_v46  ;;  %v374_v40 = vld [vmem:[%s1621_s1 + $0x5d8] sm:$0xff]  ;;  %v373_v41 = vld [vmem:[%s1621_s1 + $0x5d0] sm:$0xff]  ;;  %v372_v42 = vld [vmem:[%s1621_s1 + $0x5c8] sm:$0xff] }
  0x4c   : > { %523 = vmatpush2.msra.mxu1 %v291_v47  ;;  %447 = vmatprep.subr.mxu0 %v226_v48  ;;  %v371_v43 = vld [vmem:[%s1621_s1 + $0x5c0] sm:$0xff]  ;;  %v370_v44 = vld [vmem:[%s1621_s1 + $0x5b8] sm:$0xff]  ;;  %v369_v45 = vld [vmem:[%s1621_s1 + $0x5b0] sm:$0xff] }
  0x4d   : > { %524 = vmatprep.subr.mxu1 %v290_v49  ;;  %448 = vmatpush2.msra.mxu0 %v225_v50  ;;  %v368_v46 = vld [vmem:[%s1621_s1 + $0x5a8] sm:$0xff]  ;;  %v367_v47 = vld [vmem:[%s1621_s1 + $0x5a0] sm:$0xff]  ;;  %v366_v48 = vld [vmem:[%s1621_s1 + $0x598] sm:$0xff] }
  0x4e   : > { %525 = vmatpush2.msra.mxu1 %v289_v51  ;;  %449 = vmatprep.subr.mxu0 %v224_v52  ;;  %v365_v49 = vld [vmem:[%s1621_s1 + $0x590] sm:$0xff]  ;;  %v364_v50 = vld [vmem:[%s1621_s1 + $0x588] sm:$0xff]  ;;  %v363_v51 = vld [vmem:[%s1621_s1 + $0x580] sm:$0xff] }
  0x4f   : > { %526 = vmatprep.subr.mxu1 %v288_v53  ;;  %450 = vmatpush2.msra.mxu0 %v223_v54  ;;  %v362_v52 = vld [vmem:[%s1621_s1 + $0x578] sm:$0xff]  ;;  %v361_v53 = vld [vmem:[%s1621_s1 + $0x570] sm:$0xff]  ;;  %v360_v54 = vld [vmem:[%s1621_s1 + $0x568] sm:$0xff] }
  0x50   : > { %527 = vmatpush2.msra.mxu1 %v287_v55  ;;  %451 = vmatprep.subr.mxu0 %v222_v56  ;;  %v359_v55 = vld [vmem:[%s1621_s1 + $0x560] sm:$0xff]  ;;  %v358_v56 = vld [vmem:[%s1621_s1 + $0x558] sm:$0xff] }
  0x51   : > { %528 = vmatprep.subr.mxu1 %v286_v57  ;;  %452 = vmatpush2.msra.mxu0 %v221_v58  ;;  %v357_v57 = vld [vmem:[%s1621_s1 + $0x550] sm:$0xff]  ;;  %v356_v58 = vld [vmem:[%s1621_s1 + $0x548] sm:$0xff] }
  0x52   : > { %529 = vmatpush2.msra.mxu1 %v285_v59  ;;  %453 = vmatprep.subr.mxu0 %v220_v60  ;;  %v182_v59 = vld [vmem:[%s1340_s25 + $0x38] sm:$0xff]  ;;  %v355_v60 = vld [vmem:[%s1621_s1 + $0x540] sm:$0xff] }
  0x53   : > { %530 = vmatprep.subr.mxu1 %v284_v61  ;;  %454 = vmatpush2.msra.mxu0 %v219_v62  ;;  %v181_v61 = vld [vmem:[%s1340_s25 + $0x30] sm:$0xff]  ;;  %v354_v62 = vld [vmem:[%s1621_s1 + $0x538] sm:$0xff] }
  0x54   : > { %455 = vmatprep.mubr.f32.mxu0 %v176_v63  ;;  %531 = vmatpush2.msra.mxu1 %v283_v0  ;;  %v184_v63 = vld [vmem:[%s1340_s25 + $0x48] sm:$0xff]  ;;  %v353_v0 = vld [vmem:[%s1621_s1 + $0x530] sm:$0xff] }
  0x55   : > { %532 = vmatprep.mubr.f32.mxu1 %v178_v1  ;;  %456 = vmatmul.mubr.f32.vlgmr.msra.gmra.mxu0 %v175_v2  ;;  %v352_v1 = vld [vmem:[%s1621_s1 + $0x528] sm:$0xff]  ;;  %v183_v2 = vld [vmem:[%s1340_s25 + $0x40] sm:$0xff] }
  0x56   : > { %533 = vmatmul.mubr.f32.vlgmr.msra.gmra.mxu1 %v177_v3  ;;  %545 = vmatprep.subr.mxu0 %v346_v4  ;;  %v351_v3 = vld [vmem:[%s1621_s1 + $0x520] sm:$0xff] }
  0x57   : > { %718 = vmatprep.subr.mxu1 %v346_v4  ;;  %546 = vmatpush1.msra.mxu0 %v345_v5  ;;  %v350_v4 = vld [vmem:[%s1621_s1 + $0x518] sm:$0xff] }
  0x58   : > { %750 = vmatpush1.msra.mxu1 %v345_v5  ;;  %547 = vmatprep.subr.mxu0 %v344_v6  ;;  %v349_v5 = vld [vmem:[%s1621_s1 + $0x510] sm:$0xff] }
  0x59   : > { %719 = vmatprep.subr.mxu1 %v344_v6  ;;  %548 = vmatpush1.msra.mxu0 %v343_v7  ;;  %v348_v6 = vld [vmem:[%s1621_s1 + $0x508] sm:$0xff] }
  0x5a   : > { %751 = vmatpush1.msra.mxu1 %v343_v7  ;;  %549 = vmatprep.subr.mxu0 %v342_v8  ;;  %v347_v7 = vld [vmem:[%s1621_s1 + $0x500] sm:$0xff] }
  0x5b   : > { %720 = vmatprep.subr.mxu1 %v342_v8  ;;  %550 = vmatpush1.msra.mxu0 %v341_v9  ;;  %v180_v8 = vld [vmem:[%s1340_s25 + $0x28] sm:$0xff] }
  0x5c   : > { %752 = vmatpush1.msra.mxu1 %v341_v9  ;;  %551 = vmatprep.subr.mxu0 %v340_v10  ;;  %v186_v9 = vld [vmem:[%s1340_s25 + $0x58] sm:$0xff] }
  0x5d   : > { %721 = vmatprep.subr.mxu1 %v340_v10  ;;  %552 = vmatpush1.msra.mxu0 %v339_v11  ;;  %v179_v10 = vld [vmem:[%s1340_s25 + $0x20] sm:$0xff] }
  0x5e   : > { %753 = vmatpush1.msra.mxu1 %v339_v11  ;;  %553 = vmatprep.subr.mxu0 %v338_v12  ;;  %v185_v11 = vld [vmem:[%s1340_s25 + $0x50] sm:$0xff]  ;;  %s164_s25 = sand.u32 1, %s876_s13  }
  0x5f   : > { %722 = vmatprep.subr.mxu1 %v338_v12  ;;  %554 = vmatpush1.msra.mxu0 %v337_v13  ;;  %v381_v12 = vlaneseq  ;;  %s707_s19 = sshll.u32 %s164_s25, 5  ;;  %s1580_s16 = scalar_lea.sflag [#allocation3], %s164_s25 }
  0x60   : > { %754 = vmatpush1.msra.mxu1 %v337_v13  ;;  %555 = vmatprep.subr.mxu0 %v336_v14  ;;  %s166_s28 = scalar_lea.vmem [#allocation2], %s707_s19 }
  0x61   : > { %723 = vmatprep.subr.mxu1 %v336_v14  ;;  %556 = vmatpush1.msra.mxu0 %v335_v15  ;;  %v382_v13 = vshrl.u32 %v381_v12, 7  ;;  %s641_s5 = sshll.u32 %s166_s28, 4  ;;  %s1571_s5 = int_to_ptr.vmem [resolvable:$true] %s641_s5 }
  0x62   : > { %755 = vmatpush1.msra.mxu1 %v335_v15  ;;  %557 = vmatprep.subr.mxu0 %v334_v16  ;;  %s824_s10 = scalar_lea.vmem %s1571_s5, 512  ;;  %p831_p0 = scmp.lt.s32.totalorder %s1571_s5, %s829_s17 }
  0x63   : > { %724 = vmatprep.subr.mxu1 %v334_v16  ;;  %558 = vmatpush1.msra.mxu0 %v333_v17  ;;  %v383_v15 = vsub.s32 0, %v382_v13  ;;  %v379_v16 = vld [vmem:[%s1622_s2] sm:$0x3]  ;;  %p825_p11 = scmp.ne.s32.totalorder %s1571_s5, %s824_s10  ;;  %p832_p1 = scmp.lt.s32.totalorder %s830_s24, %s824_s10 }
  0x64   : > { %756 = vmatpush1.msra.mxu1 %v333_v17  ;;  %559 = vmatprep.subr.mxu0 %v332_v18 }
  0x65   : > { %725 = vmatprep.subr.mxu1 %v332_v18  ;;  %560 = vmatpush1.msra.mxu0 %v331_v19  ;;  %p826_p12 = pnand %p825_p11, %p947_p5  ;;  %p833_p2 = por %p832_p1, %p831_p0 }
  0x66   : > { %757 = vmatpush1.msra.mxu1 %v331_v19  ;;  %561 = vmatprep.subr.mxu0 %v330_v20  ;;  %v387_v19 = vsub.s32 1, %v382_v13 }
  0x67   : > { %726 = vmatprep.subr.mxu1 %v330_v20  ;;  %562 = vmatpush1.msra.mxu0 %v329_v21  ;;  %p827_p13 = pneg %p826_p12 }
  0x68   : > { %758 = vmatpush1.msra.mxu1 %v329_v21  ;;  %563 = vmatprep.subr.mxu0 %v328_v22  ;;  %v384_v21 = vrot.slane %v379_v16, %v383_v15 }
  0x69   : > { %727 = vmatprep.subr.mxu1 %v328_v22  ;;  %564 = vmatpush1.msra.mxu0 %v327_v23  ;;  %p834_p3 = pnand %p833_p2, %p827_p13 }
  0x6a   : > { %759 = vmatpush1.msra.mxu1 %v327_v23  ;;  %565 = vmatprep.subr.mxu0 %v326_v24  ;;  %v388_v23 = vrot.slane %v379_v16, %v387_v19 }
  0x6b   : > { %728 = vmatprep.subr.mxu1 %v326_v24  ;;  %566 = vmatpush1.msra.mxu0 %v325_v25 }
  0x6c   : > { %760 = vmatpush1.msra.mxu1 %v325_v25  ;;  %567 = vmatprep.subr.mxu0 %v324_v26 }
  0x6d   : > { %729 = vmatprep.subr.mxu1 %v324_v26  ;;  %568 = vmatpush1.msra.mxu0 %v323_v27 }
  0x6e   : > { %761 = vmatpush1.msra.mxu1 %v323_v27  ;;  %569 = vmatprep.subr.mxu0 %v322_v28 }
  0x6f   : > { %730 = vmatprep.subr.mxu1 %v322_v28  ;;  %570 = vmatpush1.msra.mxu0 %v321_v29 }
  0x70   : > { %762 = vmatpush1.msra.mxu1 %v321_v29  ;;  %571 = vmatprep.subr.mxu0 %v320_v30 }
  0x71   : > { %731 = vmatprep.subr.mxu1 %v320_v30  ;;  %572 = vmatpush1.msra.mxu0 %v319_v31 }
  0x72   : > { %763 = vmatpush1.msra.mxu1 %v319_v31  ;;  %573 = vmatprep.subr.mxu0 %v318_v32 }
  0x73   : > { %732 = vmatprep.subr.mxu1 %v318_v32  ;;  %574 = vmatpush1.msra.mxu0 %v317_v33 }
  0x74   : > { %764 = vmatpush1.msra.mxu1 %v317_v33  ;;  %575 = vmatprep.subr.mxu0 %v316_v34 }
  0x75   : > { %733 = vmatprep.subr.mxu1 %v316_v34  ;;  %576 = vmatpush1.msra.mxu0 %v315_v35 }
  0x76   : > { %765 = vmatpush1.msra.mxu1 %v315_v35  ;;  %577 = vmatprep.subr.mxu0 %v378_v36 }
  0x77   : > { %734 = vmatprep.subr.mxu1 %v378_v36  ;;  %578 = vmatpush2.msra.mxu0 %v377_v37 }
  0x78   : > { %766 = vmatpush2.msra.mxu1 %v377_v37  ;;  %579 = vmatprep.subr.mxu0 %v376_v38 }
  0x79   : > { %735 = vmatprep.subr.mxu1 %v376_v38  ;;  %580 = vmatpush2.msra.mxu0 %v375_v39 }
  0x7a   : > { %767 = vmatpush2.msra.mxu1 %v375_v39  ;;  %581 = vmatprep.subr.mxu0 %v374_v40 }
  0x7b   : > { %736 = vmatprep.subr.mxu1 %v374_v40  ;;  %582 = vmatpush2.msra.mxu0 %v373_v41 }
  0x7c   : > { %768 = vmatpush2.msra.mxu1 %v373_v41  ;;  %583 = vmatprep.subr.mxu0 %v372_v42 }
  0x7d   : > { %737 = vmatprep.subr.mxu1 %v372_v42  ;;  %584 = vmatpush2.msra.mxu0 %v371_v43 }
  0x7e   : > { %769 = vmatpush2.msra.mxu1 %v371_v43  ;;  %585 = vmatprep.subr.mxu0 %v370_v44 }
  0x7f   : > { %738 = vmatprep.subr.mxu1 %v370_v44  ;;  %586 = vmatpush2.msra.mxu0 %v369_v45 }
  0x80   : > { %770 = vmatpush2.msra.mxu1 %v369_v45  ;;  %587 = vmatprep.subr.mxu0 %v368_v46 }
  0x81   : > { %739 = vmatprep.subr.mxu1 %v368_v46  ;;  %588 = vmatpush2.msra.mxu0 %v367_v47 }
  0x82   : > { %771 = vmatpush2.msra.mxu1 %v367_v47  ;;  %589 = vmatprep.subr.mxu0 %v366_v48 }
  0x83   : > { %740 = vmatprep.subr.mxu1 %v366_v48  ;;  %590 = vmatpush2.msra.mxu0 %v365_v49 }
  0x84   : > { %772 = vmatpush2.msra.mxu1 %v365_v49  ;;  %591 = vmatprep.subr.mxu0 %v364_v50 }
  0x85   : > { %741 = vmatprep.subr.mxu1 %v364_v50  ;;  %592 = vmatpush2.msra.mxu0 %v363_v51 }
  0x86   : > { %773 = vmatpush2.msra.mxu1 %v363_v51  ;;  %593 = vmatprep.subr.mxu0 %v362_v52 }
  0x87   : > { %742 = vmatprep.subr.mxu1 %v362_v52  ;;  %594 = vmatpush2.msra.mxu0 %v361_v53 }
  0x88   : > { %774 = vmatpush2.msra.mxu1 %v361_v53  ;;  %595 = vmatprep.subr.mxu0 %v360_v54 }
  0x89   : > { %743 = vmatprep.subr.mxu1 %v360_v54  ;;  %596 = vmatpush2.msra.mxu0 %v359_v55 }
  0x8a   : > { %775 = vmatpush2.msra.mxu1 %v359_v55  ;;  %597 = vmatprep.subr.mxu0 %v358_v56 }
  0x8b   : > { %744 = vmatprep.subr.mxu1 %v358_v56  ;;  %598 = vmatpush2.msra.mxu0 %v357_v57 }
  0x8c   : > { %776 = vmatpush2.msra.mxu1 %v357_v57  ;;  %599 = vmatprep.subr.mxu0 %v356_v58 }
  0x8d   : > { %745 = vmatprep.subr.mxu1 %v356_v58  ;;  %461 = vmatprep.mubr.f32.mxu0 %v182_v59 }
  0x8e   : > { %600 = vmatpush2.msra.mxu0 %v355_v60  ;;  %777 = vmatpush2.msra.mxu1 %v355_v60 }
  0x8f   : > { %462 = vmatmul.mubr.f32.gmra.mxu0 %v181_v61  ;;  %601 = vmatprep.subr.mxu0 %v354_v62 }
  0x90   : > { %746 = vmatprep.subr.mxu1 %v354_v62  ;;  %538 = vmatprep.mubr.f32.mxu1 %v184_v63 }
  0x91   : > { %602 = vmatpush2.msra.mxu0 %v353_v0  ;;  %778 = vmatpush2.msra.mxu1 %v353_v0 }
  0x92   : > { %603 = vmatprep.subr.mxu0 %v352_v1  ;;  %539 = vmatmul.mubr.f32.gmra.mxu1 %v183_v2 }
  0x93   : > { %747 = vmatprep.subr.mxu1 %v352_v1  ;;  %604 = vmatpush2.msra.mxu0 %v351_v3 }
  0x94   : > { %779 = vmatpush2.msra.mxu1 %v351_v3  ;;  %605 = vmatprep.subr.mxu0 %v350_v4 }
  0x95   : > { %748 = vmatprep.subr.mxu1 %v350_v4  ;;  %606 = vmatpush2.msra.mxu0 %v349_v5 }
  0x96   : > { %780 = vmatpush2.msra.mxu1 %v349_v5  ;;  %607 = vmatprep.subr.mxu0 %v348_v6 }
  0x97   : > { %749 = vmatprep.subr.mxu1 %v348_v6  ;;  %608 = vmatpush2.msra.mxu0 %v347_v7 }
  0x98   : > { %781 = vmatpush2.msra.mxu1 %v347_v7  ;;  %609 = vmatprep.mubr.f32.mxu0 %v180_v8 }
  0x99   : > { %615 = vmatprep.mubr.f32.mxu1 %v186_v9  ;;  %610 = vmatmul.mubr.f32.vlgmr.msra.gmra.mxu0 %v179_v10 }
  0x9a   : > { %616 = vmatmul.mubr.f32.vlgmr.msra.gmra.mxu1 %v185_v11 }
 0x115   : > { %v457_v14 = vpop.f32.mrf.mxu0 }
 0x116   : > { %v534_v17 = vpop.f32.mrf.mxu1  ;;  %v458_v26 = vadd.f32 %v457_v14, %v384_v21 }
 0x117   : > { %v459_v18 = vpop.f32.mrf.mxu0 }
 0x118   : > { %v536_v22 = vpop.f32.mrf.mxu1  ;;  %v460_v28 = vadd.f32 %v459_v18, %v388_v23  ;;  %v535_v31 = vadd.f32 %v534_v17, %v458_v26 }
 0x11a   : > { %v537_v35 = vadd.f32 %v536_v22, %v460_v28 }
 0x14f   : > { %v463_v20 = vpop.f32.mrf.mxu0 }
 0x150   : > { %v464_v27 = vadd.f32 %v463_v20, %v384_v21 }
 0x151   : > { %v465_v24 = vpop.f32.mrf.mxu0 }
 0x152   : > { %v540_v25 = vpop.f32.mrf.mxu1  ;;  %v466_v29 = vadd.f32 %v465_v24, %v388_v23 }
 0x153   : > { %v541_v32 = vadd.f32 %v540_v25, %v464_v27 }
 0x154   : > { %v542_v30 = vpop.f32.mrf.mxu1 }
 0x155   : > { %v543_v36 = vadd.f32 %v542_v30, %v466_v29 }
 0x159   : > { %v611_v33 = vpop.f32.mrf.mxu0 }
 0x15a   : > { %v617_v34 = vpop.f32.mrf.mxu1  ;;  %v612_v37 = vadd.f32 %v611_v33, %v535_v31 }
 0x15b   : > { %v618_v38 = vadd.f32 %v617_v34, %v541_v32  ;;  %v613_v39 = vpop.f32.mrf.mxu0 }
 0x15c   : > { %v619_v40 = vpop.f32.mrf.mxu1  ;;  %622 = vst [vmem:[%s166_s28] sm:$0xff] %v612_v37  ;;  %v614_v41 = vadd.f32 %v613_v39, %v537_v35 }
 0x15d   : > { %624 = vst [vmem:[%s166_s28 + $0x10] sm:$0xff] %v618_v38  ;;  %v620_v42 = vadd.f32 %v619_v40, %v543_v36 }
 0x15e   : > { %623 = vst [vmem:[%s166_s28 + $0x8] sm:$0xff] %v614_v41 }
 0x15f   : > { %625 = vst [vmem:[%s166_s28 + $0x18] sm:$0xff] %v620_v42 }
 0x160   : > { %837 = shalt.err (!%p834_p3)
}
 0x161   : > { %s838_s26 = scalar_lea.hbm %s1576_s9, 512  ;;  %s842_s30 = scalar_lea.hbm %s1623_s3, 1024 }
 0x162   : > { %p839_p4 = scmp.ne.s32.totalorder %s1576_s9, %s838_s26  ;;  %p843_p9 = scmp.lt.s32.totalorder %s1576_s9, %s1623_s3 }
 0x163   : > { %p844_p10 = scmp.lt.s32.totalorder %s842_s30, %s838_s26 }
 0x164   : > { %p840_p7 = pnand %p839_p4, %p947_p5 }
 0x165   : > { %p845_p11 = por %p844_p10, %p843_p9 }
 0x166   : > { %p841_p8 = pneg %p840_p7 }
 0x168   : > { %p846_p12 = pnand %p845_p11, %p841_p8 }
 0x16a   : > { %849 = shalt.err (!%p846_p12)
}
 0x16b   : > { %s887_s25 = smov 256   ;;  %s888_s19 = smov 16  }
 0x16c   : > { %783 = dma.vmem_to_hbm [thread:$0]  (%p947_p5), %s1571_s5, 512, %s1576_s9, %s1580_s16, %s887_s25, %s887_s25, %s888_s19  }
 0x16d PF: > { %p789_p13 = scmp.ge.s32.totalorder %s884_s15, 2  ;;  %s656_s28 = sand.u32 1, %s872_s12  }
 0x16e   : > { %s657_s6 = scalar_lea.sflag [#allocation3], %s656_s28 }
 0x16f   : > { %p786_p0 = pnand %p789_p13, %p951_p6 }
 0x171   : > { %p787_p1 = pneg %p786_p0 }
 0x173   : > { %867 = dma.done.wait (%p787_p1), %s657_s6, 512  }
 0x174   : > { %869 = vsyncadd (%p787_p1), %s657_s6, 4294966784  ;;  %p13_p2 = scmp.ge.s32.totalorder %s934_s18, 4   ;;  %s1627_s12 = smov %s876_s13 }
 0x175   : > { %s1628_s13 = smov %s880_s14  ;;  %s1629_s14 = smov %s945_s21 }
 0x176   : > { %s1630_s15 = smov %s934_s18  ;;  %15 = sbr.rel (!%p13_p2) target bundleno = 3 (0x3), region = 67 }
 0x17b   :  { %662 = vsyncpa [#allocation3], 1 }
 0x17c   :  { %664 = vsyncpa [#allocation3 + $0x1], 1 }

</bundles_post_ra>
